<compile_context>
chip_gen: v7x
topology: tpu7x:2x2x1
jax: 0.10.0
libtpu: 0.0.40
codegen_flags: <defaults>
</compile_context>

<pallas_src>
import math
from functools import partial

import jax
import jax.numpy as jnp
from jax.experimental import pallas as pl
from jax.experimental.pallas import tpu as pltpu


# ------------------------------ Pallas kernel -------------------------------

def _mha_kernel(q_ref, k_ref, v_ref, m_ref,
                wq_ref, bq_ref, wk_ref, bk_ref, wv_ref, bv_ref,
                wo_ref, bo_ref,
                o_ref, aw_ref, *, num_heads):
    """Fused multi-head attention for one batch element.

    q_ref : (1, Sq, D)    k_ref / v_ref : (1, Sk, D)    m_ref : (1, Sq, Sk)
    o_ref : (1, Sq, D)    aw_ref        : (1, H, Sq, Sk)
    """
    xq = q_ref[0]                                   # (Sq, D)
    xk = k_ref[0]                                   # (Sk, D)
    xv = v_ref[0]                                   # (Sk, D)
    d_model = xq.shape[-1]
    depth = d_model // num_heads
    scale = 1.0 / math.sqrt(float(depth))

    # additive mask (1 = masked), broadcast over heads in-register
    neg_mask = m_ref[0] * (-1000000000.0)           # (Sq, Sk)

    # fused Q / K / V projections -- one kernel launch for all three
    q = jnp.dot(xq, wq_ref[...], preferred_element_type=jnp.float32) + bq_ref[...]
    k = jnp.dot(xk, wk_ref[...], preferred_element_type=jnp.float32) + bk_ref[...]
    v = jnp.dot(xv, wv_ref[...], preferred_element_type=jnp.float32) + bv_ref[...]

    # all heads handled inside this grid step (static, unrolled loop)
    ctx_parts = []
    for h in range(num_heads):
        lo, hi = h * depth, (h + 1) * depth
        qh = q[:, lo:hi]                            # (Sq, depth)
        kh = k[:, lo:hi]                            # (Sk, depth)
        vh = v[:, lo:hi]                            # (Sk, depth)

        # q @ k^T (contract over depth) -> (Sq, Sk)
        logits = jax.lax.dot_general(
            qh, kh, (((1,), (1,)), ((), ())),
            preferred_element_type=jnp.float32) * scale
        logits = logits + neg_mask
        logits = logits - jnp.max(logits, axis=-1, keepdims=True)
        e = jnp.exp(logits)
        attn = e * pl.reciprocal(jnp.sum(e, axis=-1, keepdims=True), approx=True)

        aw_ref[0, h] = attn                         # per-head attention weights
        ctx_parts.append(
            jnp.dot(attn, vh, preferred_element_type=jnp.float32))  # (Sq, depth)

    concat = jnp.concatenate(ctx_parts, axis=-1)    # (Sq, D)
    o_ref[0] = (jnp.dot(concat, wo_ref[...], preferred_element_type=jnp.float32)
                + bo_ref[...])


# ---------------------------- pallas_call wrapper ----------------------------

def multi_head_attention(params, q, k, v, mask, *, num_heads):
    """q: (B,Sq,D); k,v: (B,Sk,D); mask broadcastable to (B,1,Sq,Sk) or None."""
    B, Sq, D = q.shape
    Sk = k.shape[1]
    assert D % num_heads == 0

    if mask is None:
        mask3 = jnp.zeros((B, Sq, Sk), jnp.float32)
    else:
        # head broadcast happens in-kernel; only (B, Sq, Sk) is materialized
        mask3 = jnp.broadcast_to(mask.astype(jnp.float32),
                                 (B, 1, Sq, Sk)).reshape(B, Sq, Sk)

    def full2d(shape):
        return pl.BlockSpec(shape, lambda i: (0, 0))   # weight resident in VMEM

    out, attn_w = pl.pallas_call(
        partial(_mha_kernel, num_heads=num_heads),
        grid=(B,),
        out_shape=(jax.ShapeDtypeStruct((B, Sq, D), jnp.float32),
                   jax.ShapeDtypeStruct((B, num_heads, Sq, Sk), jnp.float32)),
        in_specs=[
            pl.BlockSpec((1, Sq, D), lambda i: (i, 0, 0)),      # q
            pl.BlockSpec((1, Sk, D), lambda i: (i, 0, 0)),      # k
            pl.BlockSpec((1, Sk, D), lambda i: (i, 0, 0)),      # v
            pl.BlockSpec((1, Sq, Sk), lambda i: (i, 0, 0)),     # mask
            full2d((D, D)), full2d((1, D)),                     # wq, bq
            full2d((D, D)), full2d((1, D)),                     # wk, bk
            full2d((D, D)), full2d((1, D)),                     # wv, bv
            full2d((D, D)), full2d((1, D)),                     # wo, bo
        ],
        out_specs=(pl.BlockSpec((1, Sq, D), lambda i: (i, 0, 0)),
                   pl.BlockSpec((1, num_heads, Sq, Sk),
                                lambda i: (i, 0, 0, 0))),
        compiler_params=pltpu.CompilerParams(
            dimension_semantics=("parallel",)),
    )(q, k, v, mask3,
      params['wq'], params['bq'],
      params['wk'], params['bk'],
      params['wv'], params['bv'],
      params['wo'], params['bo'])
    return out, attn_w


# ------------------------- parameters & pure-JAX ref -------------------------

def init_params(key, d_model):
    ks = jax.random.split(key, 8)

    def lin(kw, kb):
        w = jax.random.normal(kw, (d_model, d_model), jnp.float32) / math.sqrt(d_model)
        b = 0.1 * jax.random.normal(kb, (1, d_model), jnp.float32)
        return w, b

    p = {}
    p['wq'], p['bq'] = lin(ks[0], ks[1])
    p['wk'], p['bk'] = lin(ks[2], ks[3])
    p['wv'], p['bv'] = lin(ks[4], ks[5])
    p['wo'], p['bo'] = lin(ks[6], ks[7])
    return p


def mha_reference(params, q, k, v, mask, *, num_heads):
    """Pure-JAX mirror of the PyTorch module (for correctness checking)."""
    B, Sq, D = q.shape
    Sk = k.shape[1]
    depth = D // num_heads

    qp = q @ params['wq'] + params['bq']
    kp = k @ params['wk'] + params['bk']
    vp = v @ params['wv'] + params['bv']

    def split(x, S):
        return x.reshape(B, S, num_heads, depth).transpose(0, 2, 1, 3)

    qh, kh, vh = split(qp, Sq), split(kp, Sk), split(vp, Sk)
    logits = jnp.einsum('bhqd,bhkd->bhqk', qh, kh) / jnp.sqrt(jnp.float32(depth))
    if mask is not None:
        logits = logits + mask * (-1000000000.0)
    attn = jax.nn.softmax(logits, axis=-1)
    ctx = jnp.einsum('bhqk,bhkd->bhqd', attn, vh)
    concat = ctx.transpose(0, 2, 1, 3).reshape(B, Sq, D)
    out = concat @ params['wo'] + params['bo']
    return out, attn


# ----------------------------------- main ------------------------------------

if __name__ == "__main__":
    B, SQ, SK, D_MODEL, NUM_HEADS = 2, 8, 12, 32, 4

    key = jax.random.PRNGKey(0)
    kp, kq, kk, kv = jax.random.split(key, 4)

    params = init_params(kp, D_MODEL)

    q = jax.random.normal(kq, (B, SQ, D_MODEL), jnp.float32)
    k = jax.random.normal(kk, (B, SK, D_MODEL), jnp.float32)
    v = jax.random.normal(kv, (B, SK, D_MODEL), jnp.float32)

    # padding mask over key positions (1 = masked), shape (B, 1, 1, Sk)
    mask = jnp.zeros((B, 1, 1, SK), jnp.float32)
    mask = mask.at[1, 0, 0, SK - 3:].set(1.0)

    out, attn_w = multi_head_attention(params, q, k, v, mask,
                                       num_heads=NUM_HEADS)
    jax.block_until_ready(out)
    jax.block_until_ready(attn_w)

    assert out.shape == (B, SQ, D_MODEL)
    assert attn_w.shape == (B, NUM_HEADS, SQ, SK)
    assert bool(jnp.all(jnp.isfinite(out)))
    assert bool(jnp.all(jnp.isfinite(attn_w)))

    out_ref, attn_ref = mha_reference(params, q, k, v, mask,
                                      num_heads=NUM_HEADS)
    assert bool(jnp.allclose(out, out_ref, atol=1e-2, rtol=1e-2)), \
        float(jnp.max(jnp.abs(out - out_ref)))
    assert bool(jnp.allclose(attn_w, attn_ref, atol=1e-2, rtol=1e-2)), \
        float(jnp.max(jnp.abs(attn_w - attn_ref)))

    print("KERNEL_OK")
</pallas_src>

<mosaic_0001>
module attributes {stable_mosaic.version = 11 : i64} {
  func.func @_mha_kernel(%arg0: i32, %arg1: memref<1x8x32xf32, #tpu.memory_space<vmem>>, %arg2: memref<1x12x32xf32, #tpu.memory_space<vmem>>, %arg3: memref<1x12x32xf32, #tpu.memory_space<vmem>>, %arg4: memref<1x8x12xf32, #tpu.memory_space<vmem>>, %arg5: memref<32x32xf32, #tpu.memory_space<vmem>>, %arg6: memref<1x32xf32, #tpu.memory_space<vmem>>, %arg7: memref<32x32xf32, #tpu.memory_space<vmem>>, %arg8: memref<1x32xf32, #tpu.memory_space<vmem>>, %arg9: memref<32x32xf32, #tpu.memory_space<vmem>>, %arg10: memref<1x32xf32, #tpu.memory_space<vmem>>, %arg11: memref<32x32xf32, #tpu.memory_space<vmem>>, %arg12: memref<1x32xf32, #tpu.memory_space<vmem>>, %arg13: memref<1x8x32xf32, #tpu.memory_space<vmem>>, %arg14: memref<1x4x8x12xf32, #tpu.memory_space<vmem>>) attributes {dimension_semantics = [#tpu.dimension_semantics<parallel>], iteration_bounds = array<i64: 2>, scalar_prefetch = 0 : i64, scratch_operands = 0 : i64, tpu.core_type = #tpu.core_type<tc>, window_params = [{transform_indices = @transform_0, window_bounds = array<i64: 1, 8, 32>}, {transform_indices = @transform_1, window_bounds = array<i64: 1, 12, 32>}, {transform_indices = @transform_2, window_bounds = array<i64: 1, 12, 32>}, {transform_indices = @transform_3, window_bounds = array<i64: 1, 8, 12>}, {pipeline_mode = #tpu.pipeline_mode<synchronous>, transform_indices = @transform_4, window_bounds = array<i64: 32, 32>}, {pipeline_mode = #tpu.pipeline_mode<synchronous>, transform_indices = @transform_5, window_bounds = array<i64: 1, 32>}, {pipeline_mode = #tpu.pipeline_mode<synchronous>, transform_indices = @transform_6, window_bounds = array<i64: 32, 32>}, {pipeline_mode = #tpu.pipeline_mode<synchronous>, transform_indices = @transform_7, window_bounds = array<i64: 1, 32>}, {pipeline_mode = #tpu.pipeline_mode<synchronous>, transform_indices = @transform_8, window_bounds = array<i64: 32, 32>}, {pipeline_mode = #tpu.pipeline_mode<synchronous>, transform_indices = @transform_9, window_bounds = array<i64: 1, 32>}, {pipeline_mode = #tpu.pipeline_mode<synchronous>, transform_indices = @transform_10, window_bounds = array<i64: 32, 32>}, {pipeline_mode = #tpu.pipeline_mode<synchronous>, transform_indices = @transform_11, window_bounds = array<i64: 1, 32>}, {transform_indices = @transform_12, window_bounds = array<i64: 1, 8, 32>}, {transform_indices = @transform_13, window_bounds = array<i64: 1, 4, 8, 12>}]} {
    %c0 = arith.constant 0 : index
    %c0_0 = arith.constant 0 : index
    %c0_1 = arith.constant 0 : index
    %0 = vector.load %arg1[%c0, %c0_0, %c0_1] : memref<1x8x32xf32, #tpu.memory_space<vmem>>, vector<1x8x32xf32>
    %1 = vector.shape_cast %0 : vector<1x8x32xf32> to vector<8x32xf32>
    %c0_2 = arith.constant 0 : index
    %c0_3 = arith.constant 0 : index
    %c0_4 = arith.constant 0 : index
    %2 = vector.load %arg2[%c0_2, %c0_3, %c0_4] : memref<1x12x32xf32, #tpu.memory_space<vmem>>, vector<1x12x32xf32>
    %3 = vector.shape_cast %2 : vector<1x12x32xf32> to vector<12x32xf32>
    %c0_5 = arith.constant 0 : index
    %c0_6 = arith.constant 0 : index
    %c0_7 = arith.constant 0 : index
    %4 = vector.load %arg3[%c0_5, %c0_6, %c0_7] : memref<1x12x32xf32, #tpu.memory_space<vmem>>, vector<1x12x32xf32>
    %5 = vector.shape_cast %4 : vector<1x12x32xf32> to vector<12x32xf32>
    %c0_8 = arith.constant 0 : index
    %c0_9 = arith.constant 0 : index
    %c0_10 = arith.constant 0 : index
    %6 = vector.load %arg4[%c0_8, %c0_9, %c0_10] : memref<1x8x12xf32, #tpu.memory_space<vmem>>, vector<1x8x12xf32>
    %7 = vector.shape_cast %6 : vector<1x8x12xf32> to vector<8x12xf32>
    %cst = arith.constant -1.000000e+09 : f32
    %8 = vector.broadcast %cst : f32 to vector<8x12xf32>
    %9 = arith.mulf %7, %8 : vector<8x12xf32>
    %c0_11 = arith.constant 0 : index
    %c0_12 = arith.constant 0 : index
    %10 = vector.load %arg5[%c0_11, %c0_12] : memref<32x32xf32, #tpu.memory_space<vmem>>, vector<32x32xf32>
    %cst_13 = arith.constant dense<0.000000e+00> : vector<8x32xf32>
    %11 = tpu.matmul %1, %10, %cst_13 {dimension_numbers = #tpu.dot_dimension_numbers<[1], [0], [0], [1], [0, 0, 1, 1], [], []>} : vector<8x32xf32>, vector<32x32xf32>, vector<8x32xf32> -> vector<8x32xf32>
    %c0_14 = arith.constant 0 : index
    %c0_15 = arith.constant 0 : index
    %12 = vector.load %arg6[%c0_14, %c0_15] : memref<1x32xf32, #tpu.memory_space<vmem>>, vector<1x32xf32>
    %13 = vector.broadcast %12 : vector<1x32xf32> to vector<8x32xf32>
    %14 = arith.addf %11, %13 : vector<8x32xf32>
    %c0_16 = arith.constant 0 : index
    %c0_17 = arith.constant 0 : index
    %15 = vector.load %arg7[%c0_16, %c0_17] : memref<32x32xf32, #tpu.memory_space<vmem>>, vector<32x32xf32>
    %cst_18 = arith.constant dense<0.000000e+00> : vector<12x32xf32>
    %16 = tpu.matmul %3, %15, %cst_18 {dimension_numbers = #tpu.dot_dimension_numbers<[1], [0], [0], [1], [0, 0, 1, 1], [], []>} : vector<12x32xf32>, vector<32x32xf32>, vector<12x32xf32> -> vector<12x32xf32>
    %c0_19 = arith.constant 0 : index
    %c0_20 = arith.constant 0 : index
    %17 = vector.load %arg8[%c0_19, %c0_20] : memref<1x32xf32, #tpu.memory_space<vmem>>, vector<1x32xf32>
    %18 = vector.broadcast %17 : vector<1x32xf32> to vector<12x32xf32>
    %19 = arith.addf %16, %18 : vector<12x32xf32>
    %c0_21 = arith.constant 0 : index
    %c0_22 = arith.constant 0 : index
    %20 = vector.load %arg9[%c0_21, %c0_22] : memref<32x32xf32, #tpu.memory_space<vmem>>, vector<32x32xf32>
    %cst_23 = arith.constant dense<0.000000e+00> : vector<12x32xf32>
    %21 = tpu.matmul %5, %20, %cst_23 {dimension_numbers = #tpu.dot_dimension_numbers<[1], [0], [0], [1], [0, 0, 1, 1], [], []>} : vector<12x32xf32>, vector<32x32xf32>, vector<12x32xf32> -> vector<12x32xf32>
    %c0_24 = arith.constant 0 : index
    %c0_25 = arith.constant 0 : index
    %22 = vector.load %arg10[%c0_24, %c0_25] : memref<1x32xf32, #tpu.memory_space<vmem>>, vector<1x32xf32>
    %23 = vector.broadcast %22 : vector<1x32xf32> to vector<12x32xf32>
    %24 = arith.addf %21, %23 : vector<12x32xf32>
    %25 = vector.extract_strided_slice %14 {offsets = [0, 0], sizes = [8, 8], strides = [1, 1]} : vector<8x32xf32> to vector<8x8xf32>
    %26 = vector.extract_strided_slice %19 {offsets = [0, 0], sizes = [12, 8], strides = [1, 1]} : vector<12x32xf32> to vector<12x8xf32>
    %27 = vector.extract_strided_slice %24 {offsets = [0, 0], sizes = [12, 8], strides = [1, 1]} : vector<12x32xf32> to vector<12x8xf32>
    %cst_26 = arith.constant dense<0.000000e+00> : vector<8x12xf32>
    %28 = tpu.matmul %25, %26, %cst_26 {dimension_numbers = #tpu.dot_dimension_numbers<[1], [1], [0], [0], [0, 0, 1, 0], [], []>} : vector<8x8xf32>, vector<12x8xf32>, vector<8x12xf32> -> vector<8x12xf32>
    %cst_27 = arith.constant 0.353553385 : f32
    %29 = vector.broadcast %cst_27 : f32 to vector<8x12xf32>
    %30 = arith.mulf %28, %29 : vector<8x12xf32>
    %31 = arith.addf %30, %9 : vector<8x12xf32>
    %cst_28 = arith.constant dense<0xFF800000> : vector<8xf32>
    %32 = vector.multi_reduction <maximumf>, %31, %cst_28 [1] : vector<8x12xf32> to vector<8xf32>
    %33 = vector.shape_cast %32 : vector<8xf32> to vector<8x1xf32>
    %34 = vector.broadcast %33 : vector<8x1xf32> to vector<8x12xf32>
    %35 = arith.subf %31, %34 : vector<8x12xf32>
    %36 = math.exp %35 : vector<8x12xf32>
    %cst_29 = arith.constant dense<0.000000e+00> : vector<8xf32>
    %37 = vector.multi_reduction <add>, %36, %cst_29 [1] : vector<8x12xf32> to vector<8xf32>
    %38 = vector.shape_cast %37 : vector<8xf32> to vector<8x1xf32>
    %39 = tpu.reciprocal %38 {approx = true} : vector<8x1xf32> -> vector<8x1xf32>
    %40 = vector.broadcast %39 : vector<8x1xf32> to vector<8x12xf32>
    %41 = arith.mulf %36, %40 : vector<8x12xf32>
    %c0_30 = arith.constant 0 : index
    %c0_31 = arith.constant 0 : index
    %c0_32 = arith.constant 0 : index
    %c0_33 = arith.constant 0 : index
    %42 = vector.load %arg14[%c0_30, %c0_31, %c0_32, %c0_33] : memref<1x4x8x12xf32, #tpu.memory_space<vmem>>, vector<1x1x8x12xf32>
    %43 = vector.shape_cast %42 : vector<1x1x8x12xf32> to vector<8x12xf32>
    %44 = vector.shape_cast %41 : vector<8x12xf32> to vector<1x1x8x12xf32>
    tpu.vector_store %arg14[%c0_30, %c0_31, %c0_32, %c0_33], %44 {strides = array<i32>} : memref<1x4x8x12xf32, #tpu.memory_space<vmem>>, vector<1x1x8x12xf32>,
    %cst_34 = arith.constant dense<0.000000e+00> : vector<8x8xf32>
    %45 = tpu.matmul %41, %27, %cst_34 {dimension_numbers = #tpu.dot_dimension_numbers<[1], [0], [0], [1], [0, 0, 1, 1], [], []>} : vector<8x12xf32>, vector<12x8xf32>, vector<8x8xf32> -> vector<8x8xf32>
    %46 = vector.extract_strided_slice %14 {offsets = [0, 8], sizes = [8, 8], strides = [1, 1]} : vector<8x32xf32> to vector<8x8xf32>
    %47 = vector.extract_strided_slice %19 {offsets = [0, 8], sizes = [12, 8], strides = [1, 1]} : vector<12x32xf32> to vector<12x8xf32>
    %48 = vector.extract_strided_slice %24 {offsets = [0, 8], sizes = [12, 8], strides = [1, 1]} : vector<12x32xf32> to vector<12x8xf32>
    %cst_35 = arith.constant dense<0.000000e+00> : vector<8x12xf32>
    %49 = tpu.matmul %46, %47, %cst_35 {dimension_numbers = #tpu.dot_dimension_numbers<[1], [1], [0], [0], [0, 0, 1, 0], [], []>} : vector<8x8xf32>, vector<12x8xf32>, vector<8x12xf32> -> vector<8x12xf32>
    %cst_36 = arith.constant 0.353553385 : f32
    %50 = vector.broadcast %cst_36 : f32 to vector<8x12xf32>
    %51 = arith.mulf %49, %50 : vector<8x12xf32>
    %52 = arith.addf %51, %9 : vector<8x12xf32>
    %cst_37 = arith.constant dense<0xFF800000> : vector<8xf32>
    %53 = vector.multi_reduction <maximumf>, %52, %cst_37 [1] : vector<8x12xf32> to vector<8xf32>
    %54 = vector.shape_cast %53 : vector<8xf32> to vector<8x1xf32>
    %55 = vector.broadcast %54 : vector<8x1xf32> to vector<8x12xf32>
    %56 = arith.subf %52, %55 : vector<8x12xf32>
    %57 = math.exp %56 : vector<8x12xf32>
    %cst_38 = arith.constant dense<0.000000e+00> : vector<8xf32>
    %58 = vector.multi_reduction <add>, %57, %cst_38 [1] : vector<8x12xf32> to vector<8xf32>
    %59 = vector.shape_cast %58 : vector<8xf32> to vector<8x1xf32>
    %60 = tpu.reciprocal %59 {approx = true} : vector<8x1xf32> -> vector<8x1xf32>
    %61 = vector.broadcast %60 : vector<8x1xf32> to vector<8x12xf32>
    %62 = arith.mulf %57, %61 : vector<8x12xf32>
    %c0_39 = arith.constant 0 : index
    %c1 = arith.constant 1 : index
    %c0_40 = arith.constant 0 : index
    %c0_41 = arith.constant 0 : index
    %63 = vector.load %arg14[%c0_39, %c1, %c0_40, %c0_41] : memref<1x4x8x12xf32, #tpu.memory_space<vmem>>, vector<1x1x8x12xf32>
    %64 = vector.shape_cast %63 : vector<1x1x8x12xf32> to vector<8x12xf32>
    %65 = vector.shape_cast %62 : vector<8x12xf32> to vector<1x1x8x12xf32>
    tpu.vector_store %arg14[%c0_39, %c1, %c0_40, %c0_41], %65 {strides = array<i32>} : memref<1x4x8x12xf32, #tpu.memory_space<vmem>>, vector<1x1x8x12xf32>,
    %cst_42 = arith.constant dense<0.000000e+00> : vector<8x8xf32>
    %66 = tpu.matmul %62, %48, %cst_42 {dimension_numbers = #tpu.dot_dimension_numbers<[1], [0], [0], [1], [0, 0, 1, 1], [], []>} : vector<8x12xf32>, vector<12x8xf32>, vector<8x8xf32> -> vector<8x8xf32>
    %67 = vector.extract_strided_slice %14 {offsets = [0, 16], sizes = [8, 8], strides = [1, 1]} : vector<8x32xf32> to vector<8x8xf32>
    %68 = vector.extract_strided_slice %19 {offsets = [0, 16], sizes = [12, 8], strides = [1, 1]} : vector<12x32xf32> to vector<12x8xf32>
    %69 = vector.extract_strided_slice %24 {offsets = [0, 16], sizes = [12, 8], strides = [1, 1]} : vector<12x32xf32> to vector<12x8xf32>
    %cst_43 = arith.constant dense<0.000000e+00> : vector<8x12xf32>
    %70 = tpu.matmul %67, %68, %cst_43 {dimension_numbers = #tpu.dot_dimension_numbers<[1], [1], [0], [0], [0, 0, 1, 0], [], []>} : vector<8x8xf32>, vector<12x8xf32>, vector<8x12xf32> -> vector<8x12xf32>
    %cst_44 = arith.constant 0.353553385 : f32
    %71 = vector.broadcast %cst_44 : f32 to vector<8x12xf32>
    %72 = arith.mulf %70, %71 : vector<8x12xf32>
    %73 = arith.addf %72, %9 : vector<8x12xf32>
    %cst_45 = arith.constant dense<0xFF800000> : vector<8xf32>
    %74 = vector.multi_reduction <maximumf>, %73, %cst_45 [1] : vector<8x12xf32> to vector<8xf32>
    %75 = vector.shape_cast %74 : vector<8xf32> to vector<8x1xf32>
    %76 = vector.broadcast %75 : vector<8x1xf32> to vector<8x12xf32>
    %77 = arith.subf %73, %76 : vector<8x12xf32>
    %78 = math.exp %77 : vector<8x12xf32>
    %cst_46 = arith.constant dense<0.000000e+00> : vector<8xf32>
    %79 = vector.multi_reduction <add>, %78, %cst_46 [1] : vector<8x12xf32> to vector<8xf32>
    %80 = vector.shape_cast %79 : vector<8xf32> to vector<8x1xf32>
    %81 = tpu.reciprocal %80 {approx = true} : vector<8x1xf32> -> vector<8x1xf32>
    %82 = vector.broadcast %81 : vector<8x1xf32> to vector<8x12xf32>
    %83 = arith.mulf %78, %82 : vector<8x12xf32>
    %c0_47 = arith.constant 0 : index
    %c2 = arith.constant 2 : index
    %c0_48 = arith.constant 0 : index
    %c0_49 = arith.constant 0 : index
    %84 = vector.load %arg14[%c0_47, %c2, %c0_48, %c0_49] : memref<1x4x8x12xf32, #tpu.memory_space<vmem>>, vector<1x1x8x12xf32>
    %85 = vector.shape_cast %84 : vector<1x1x8x12xf32> to vector<8x12xf32>
    %86 = vector.shape_cast %83 : vector<8x12xf32> to vector<1x1x8x12xf32>
    tpu.vector_store %arg14[%c0_47, %c2, %c0_48, %c0_49], %86 {strides = array<i32>} : memref<1x4x8x12xf32, #tpu.memory_space<vmem>>, vector<1x1x8x12xf32>,
    %cst_50 = arith.constant dense<0.000000e+00> : vector<8x8xf32>
    %87 = tpu.matmul %83, %69, %cst_50 {dimension_numbers = #tpu.dot_dimension_numbers<[1], [0], [0], [1], [0, 0, 1, 1], [], []>} : vector<8x12xf32>, vector<12x8xf32>, vector<8x8xf32> -> vector<8x8xf32>
    %88 = vector.extract_strided_slice %14 {offsets = [0, 24], sizes = [8, 8], strides = [1, 1]} : vector<8x32xf32> to vector<8x8xf32>
    %89 = vector.extract_strided_slice %19 {offsets = [0, 24], sizes = [12, 8], strides = [1, 1]} : vector<12x32xf32> to vector<12x8xf32>
    %90 = vector.extract_strided_slice %24 {offsets = [0, 24], sizes = [12, 8], strides = [1, 1]} : vector<12x32xf32> to vector<12x8xf32>
    %cst_51 = arith.constant dense<0.000000e+00> : vector<8x12xf32>
    %91 = tpu.matmul %88, %89, %cst_51 {dimension_numbers = #tpu.dot_dimension_numbers<[1], [1], [0], [0], [0, 0, 1, 0], [], []>} : vector<8x8xf32>, vector<12x8xf32>, vector<8x12xf32> -> vector<8x12xf32>
    %cst_52 = arith.constant 0.353553385 : f32
    %92 = vector.broadcast %cst_52 : f32 to vector<8x12xf32>
    %93 = arith.mulf %91, %92 : vector<8x12xf32>
    %94 = arith.addf %93, %9 : vector<8x12xf32>
    %cst_53 = arith.constant dense<0xFF800000> : vector<8xf32>
    %95 = vector.multi_reduction <maximumf>, %94, %cst_53 [1] : vector<8x12xf32> to vector<8xf32>
    %96 = vector.shape_cast %95 : vector<8xf32> to vector<8x1xf32>
    %97 = vector.broadcast %96 : vector<8x1xf32> to vector<8x12xf32>
    %98 = arith.subf %94, %97 : vector<8x12xf32>
    %99 = math.exp %98 : vector<8x12xf32>
    %cst_54 = arith.constant dense<0.000000e+00> : vector<8xf32>
    %100 = vector.multi_reduction <add>, %99, %cst_54 [1] : vector<8x12xf32> to vector<8xf32>
    %101 = vector.shape_cast %100 : vector<8xf32> to vector<8x1xf32>
    %102 = tpu.reciprocal %101 {approx = true} : vector<8x1xf32> -> vector<8x1xf32>
    %103 = vector.broadcast %102 : vector<8x1xf32> to vector<8x12xf32>
    %104 = arith.mulf %99, %103 : vector<8x12xf32>
    %c0_55 = arith.constant 0 : index
    %c3 = arith.constant 3 : index
    %c0_56 = arith.constant 0 : index
    %c0_57 = arith.constant 0 : index
    %105 = vector.load %arg14[%c0_55, %c3, %c0_56, %c0_57] : memref<1x4x8x12xf32, #tpu.memory_space<vmem>>, vector<1x1x8x12xf32>
    %106 = vector.shape_cast %105 : vector<1x1x8x12xf32> to vector<8x12xf32>
    %107 = vector.shape_cast %104 : vector<8x12xf32> to vector<1x1x8x12xf32>
    tpu.vector_store %arg14[%c0_55, %c3, %c0_56, %c0_57], %107 {strides = array<i32>} : memref<1x4x8x12xf32, #tpu.memory_space<vmem>>, vector<1x1x8x12xf32>,
    %cst_58 = arith.constant dense<0.000000e+00> : vector<8x8xf32>
    %108 = tpu.matmul %104, %90, %cst_58 {dimension_numbers = #tpu.dot_dimension_numbers<[1], [0], [0], [1], [0, 0, 1, 1], [], []>} : vector<8x12xf32>, vector<12x8xf32>, vector<8x8xf32> -> vector<8x8xf32>
    %109 = tpu.concatenate %45, %66, %87, %108 in 1 : vector<8x8xf32>, vector<8x8xf32>, vector<8x8xf32>, vector<8x8xf32> -> vector<8x32xf32>
    %c0_59 = arith.constant 0 : index
    %c0_60 = arith.constant 0 : index
    %110 = vector.load %arg11[%c0_59, %c0_60] : memref<32x32xf32, #tpu.memory_space<vmem>>, vector<32x32xf32>
    %cst_61 = arith.constant dense<0.000000e+00> : vector<8x32xf32>
    %111 = tpu.matmul %109, %110, %cst_61 {dimension_numbers = #tpu.dot_dimension_numbers<[1], [0], [0], [1], [0, 0, 1, 1], [], []>} : vector<8x32xf32>, vector<32x32xf32>, vector<8x32xf32> -> vector<8x32xf32>
    %c0_62 = arith.constant 0 : index
    %c0_63 = arith.constant 0 : index
    %112 = vector.load %arg12[%c0_62, %c0_63] : memref<1x32xf32, #tpu.memory_space<vmem>>, vector<1x32xf32>
    %113 = vector.broadcast %112 : vector<1x32xf32> to vector<8x32xf32>
    %114 = arith.addf %111, %113 : vector<8x32xf32>
    %c0_64 = arith.constant 0 : index
    %c0_65 = arith.constant 0 : index
    %c0_66 = arith.constant 0 : index
    %115 = vector.load %arg13[%c0_64, %c0_65, %c0_66] : memref<1x8x32xf32, #tpu.memory_space<vmem>>, vector<1x8x32xf32>
    %116 = vector.shape_cast %115 : vector<1x8x32xf32> to vector<8x32xf32>
    %117 = vector.shape_cast %114 : vector<8x32xf32> to vector<1x8x32xf32>
    tpu.vector_store %arg13[%c0_64, %c0_65, %c0_66], %117 {strides = array<i32>} : memref<1x8x32xf32, #tpu.memory_space<vmem>>, vector<1x8x32xf32>,
    return
  }
  func.func @transform_0(%arg0: i32) -> (i32, i32, i32) {
    %c0_i32 = arith.constant 0 : i32
    %c0_i32_0 = arith.constant 0 : i32
    %c0_i32_1 = arith.constant 0 : i32
    return %arg0, %c0_i32, %c0_i32_0 : i32, i32, i32
  }
  func.func @transform_1(%arg0: i32) -> (i32, i32, i32) {
    %c0_i32 = arith.constant 0 : i32
    %c0_i32_0 = arith.constant 0 : i32
    %c0_i32_1 = arith.constant 0 : i32
    return %arg0, %c0_i32, %c0_i32_0 : i32, i32, i32
  }
  func.func @transform_2(%arg0: i32) -> (i32, i32, i32) {
    %c0_i32 = arith.constant 0 : i32
    %c0_i32_0 = arith.constant 0 : i32
    %c0_i32_1 = arith.constant 0 : i32
    return %arg0, %c0_i32, %c0_i32_0 : i32, i32, i32
  }
  func.func @transform_3(%arg0: i32) -> (i32, i32, i32) {
    %c0_i32 = arith.constant 0 : i32
    %c0_i32_0 = arith.constant 0 : i32
    %c0_i32_1 = arith.constant 0 : i32
    return %arg0, %c0_i32, %c0_i32_0 : i32, i32, i32
  }
  func.func @transform_4(%arg0: i32) -> (i32, i32) {
    %c0_i32 = arith.constant 0 : i32
    %c0_i32_0 = arith.constant 0 : i32
    %c0_i32_1 = arith.constant 0 : i32
    return %c0_i32, %c0_i32_0 : i32, i32
  }
  func.func @transform_5(%arg0: i32) -> (i32, i32) {
    %c0_i32 = arith.constant 0 : i32
    %c0_i32_0 = arith.constant 0 : i32
    %c0_i32_1 = arith.constant 0 : i32
    return %c0_i32, %c0_i32_0 : i32, i32
  }
  func.func @transform_6(%arg0: i32) -> (i32, i32) {
    %c0_i32 = arith.constant 0 : i32
    %c0_i32_0 = arith.constant 0 : i32
    %c0_i32_1 = arith.constant 0 : i32
    return %c0_i32, %c0_i32_0 : i32, i32
  }
  func.func @transform_7(%arg0: i32) -> (i32, i32) {
    %c0_i32 = arith.constant 0 : i32
    %c0_i32_0 = arith.constant 0 : i32
    %c0_i32_1 = arith.constant 0 : i32
    return %c0_i32, %c0_i32_0 : i32, i32
  }
  func.func @transform_8(%arg0: i32) -> (i32, i32) {
    %c0_i32 = arith.constant 0 : i32
    %c0_i32_0 = arith.constant 0 : i32
    %c0_i32_1 = arith.constant 0 : i32
    return %c0_i32, %c0_i32_0 : i32, i32
  }
  func.func @transform_9(%arg0: i32) -> (i32, i32) {
    %c0_i32 = arith.constant 0 : i32
    %c0_i32_0 = arith.constant 0 : i32
    %c0_i32_1 = arith.constant 0 : i32
    return %c0_i32, %c0_i32_0 : i32, i32
  }
  func.func @transform_10(%arg0: i32) -> (i32, i32) {
    %c0_i32 = arith.constant 0 : i32
    %c0_i32_0 = arith.constant 0 : i32
    %c0_i32_1 = arith.constant 0 : i32
    return %c0_i32, %c0_i32_0 : i32, i32
  }
  func.func @transform_11(%arg0: i32) -> (i32, i32) {
    %c0_i32 = arith.constant 0 : i32
    %c0_i32_0 = arith.constant 0 : i32
    %c0_i32_1 = arith.constant 0 : i32
    return %c0_i32, %c0_i32_0 : i32, i32
  }
  func.func @transform_12(%arg0: i32) -> (i32, i32, i32) {
    %c0_i32 = arith.constant 0 : i32
    %c0_i32_0 = arith.constant 0 : i32
    %c0_i32_1 = arith.constant 0 : i32
    return %arg0, %c0_i32, %c0_i32_0 : i32, i32, i32
  }
  func.func @transform_13(%arg0: i32) -> (i32, i32, i32, i32) {
    %c0_i32 = arith.constant 0 : i32
    %c0_i32_0 = arith.constant 0 : i32
    %c0_i32_1 = arith.constant 0 : i32
    %c0_i32_2 = arith.constant 0 : i32
    return %arg0, %c0_i32, %c0_i32_0, %c0_i32_1 : i32, i32, i32, i32
  }
}

</mosaic_0001>

<bundles_post_ra>
// kernel: tpu_custom_call.1
= control target key start
LH: loop header
LB: loop body
LE: loop exit
PB: predicated region body
PF: predicated region fallthrough
CT: control target
= control target key end

     0   :  { %s2889_s0 = inlined_call_operand.hbm [shape: f32[2,8,32], index: 0, kind: input, shape index: {}]   ;;  %s2890_s1 = inlined_call_operand.vmem [shape: f32[2,12,32], index: 1, kind: input, shape index: {}]   ;;  %s2891_s2 = inlined_call_operand.vmem [shape: f32[2,12,32], index: 2, kind: input, shape index: {}]   ;;  %s2892_s3 = inlined_call_operand.hbm [shape: f32[2,8,12], index: 3, kind: input, shape index: {}]   ;;  %s2893_s4 = inlined_call_operand.vmem [shape: f32[32,32], index: 4, kind: input, shape index: {}]   ;;  %s2894_s5 = inlined_call_operand.vmem [shape: f32[1,32], index: 5, kind: input, shape index: {}]   ;;  %s2895_s6 = inlined_call_operand.vmem [shape: f32[32,32], index: 6, kind: input, shape index: {}]   ;;  %s2896_s7 = inlined_call_operand.vmem [shape: f32[1,32], index: 7, kind: input, shape index: {}]   ;;  %s2897_s8 = inlined_call_operand.vmem [shape: f32[32,32], index: 8, kind: input, shape index: {}]   ;;  %s2898_s9 = inlined_call_operand.vmem [shape: f32[1,32], index: 9, kind: input, shape index: {}]   ;;  %s2899_s10 = inlined_call_operand.vmem [shape: f32[32,32], index: 10, kind: input, shape index: {}]   ;;  %s2900_s11 = inlined_call_operand.vmem [shape: f32[1,32], index: 11, kind: input, shape index: {}]   ;;  %s2901_s12 = inlined_call_operand.hbm [shape: f32[2,8,32], index: 12, kind: output, shape index: {0}]   ;;  %s2902_s13 = inlined_call_operand.hbm [shape: f32[2,4,8,12], index: 13, kind: output, shape index: {1}]  }
   0x1   :  { %2913 = sst [smem:[#allocation20_spill]] %s2889_s0 }
   0x2   :  { %19 = vsyncpa [#allocation3], 0 }
   0x3   :  { %21 = vsyncpa [#allocation3 + $0x1], 0 }
   0x4   :  { %22 = vsyncpa [#allocation6], 0 }
   0x5   :  { %24 = vsyncpa [#allocation6 + $0x1], 0 }
   0x6   :  { %25 = vsyncpa [#allocation4], 0 }
   0x7   :  { %27 = vsyncpa [#allocation4 + $0x1], 0 }
   0x8   :  { %28 = vsyncpa [#allocation9], 0 }
   0x9   :  { %30 = vsyncpa [#allocation9 + $0x1], 0  ;;  %s2437_s25 = smov 0   ;;  %s2439_s26 = smov 0  }
   0xa   :  { %s2441_s27 = smov 0   ;;  %s2443_s28 = smov 0  }
   0xb LB: > { %2914 = sst [smem:[#allocation14_spill]] %s2338_s25  ;;  %s2458_s29 = sadd.s32 4294967295, %s2350_s28   ;;  %s2350_s28 = sphi %s2443_s28, %s2945_s28   ;;  %s2346_s27 = sphi %s2441_s27, %s2947_s27   ;;  %s2342_s26 = sphi %s2439_s26, %s2949_s26   ;;  %s2338_s25 = sphi %s2437_s25, %s2948_s25  }
   0xc   : > { %2915 = sst [smem:[#allocation15_spill]] %s2346_s27  ;;  %s1810_s30 = sadd.s32 4294967294, %s2350_s28  }
   0xd   : > { %2916 = sst [smem:[#allocation16_spill]] %s2350_s28  ;;  %s2462_s14 = sadd.s32 1, %s2350_s28  }
   0xe   : > { %2917 = sst [smem:[#allocation17_spill]] %s2462_s14  ;;  %s43_s15 = sadd.s32 1, %s2346_s27 }
   0xf   : > { %s40_s16 = ssub.s32 %s2350_s28, %s2462_s14  ;;  %p50_p0 = scmp.ne.s32.totalorder %s2346_s27, %s2342_s26 }
  0x10   : > { %p41_p1 = scmp.eq.s32.totalorder %s40_s16, 0  ;;  %p51_p2 = scmp.eq.s32.totalorder %s2350_s28, 0 }
  0x11   : > { %p56_p3 = scmp.ne.s32.totalorder %s2342_s26, %s2338_s25  ;;  %p57_p4 = scmp.eq.s32.totalorder %s2458_s29, 0 }
  0x12   : > { %s2474_s17 = scalar_select %p41_p1, %s2346_s27, %s43_s15  }
  0x13   : > { %p2476_p5 = por %p51_p2, %p50_p0  ;;  %p2480_p6 = por %p57_p4, %p56_p3 }
  0x14   : > { %2918 = sst [smem:[#allocation18_spill]] %s2474_s17  ;;  %p326_p7 = scmp.eq.s32.totalorder %s2458_s29, 1 }
  0x15   : > { %s2920_s19 = scalar_select %p2480_p6, 1, 0 }
  0x16   : > { %p332_p8 = scmp.eq.s32.totalorder %s1810_s30, 1  ;;  %p2097_p10 = scmp.lt.s32.totalorder %s2350_s28, 2 }
  0x17   : > { %p2487_p11 = por %p326_p7, %p50_p0  ;;  %s2496_s22 = sand.u32 1, %s2346_s27  }
  0x18   : > { %p2491_p12 = por %p332_p8, %p56_p3  ;;  %s2907_s23 = sshll.u32 %s2350_s28, 7 }
  0x19   : > { %s2921_s20 = scalar_select %p2487_p11, 1, 0 }
  0x1a   : > { %s2922_s21 = scalar_select %p2491_p12, 1, 0 }
  0x1b   : > { %s2906_s24 = sshll.u32 %s2496_s22, 3  ;;  %s2924_s0 = sld [smem:[#allocation20_spill]] }
  0x1c   : > { %2923 = sst [smem:[#allocation19_spill]] %s2922_s21  ;;  %s406_s17 = scalar_lea.vmem [#allocation2], %s2906_s24 }
  0x1d   : > { %s413_s14 = sshll.u32 %s406_s17, 4  ;;  %p2511_p13 = pnand %p2097_p10, %p2476_p5  ;;  %s2515_s14 = int_to_ptr.vmem [resolvable:$true] %s413_s14 }
  0x1e   : > { %s403_s15 = scalar_lea.sflag [#allocation3], %s2496_s22 }
  0x1f   : > { %p2190_p3 = pneg %p2511_p13 }
  0x21   : > { %s2505_s16 = scalar_lea.hbm %s2924_s0, %s2907_s23  ;;  %s2193_s24 = scalar_lea.hbm %s2924_s0, 256 }
  0x22   : > { %s2188_s30 = scalar_lea.hbm %s2505_s16, 128  ;;  %p2194_p5 = scmp.lt.u32.totalorder %s2505_s16, %s2924_s0 }
  0x23   : > { %p2189_p2 = scmp.ne.s32.totalorder %s2505_s16, %s2188_s30  ;;  %p2195_p8 = scmp.lt.u32.totalorder %s2193_s24, %s2188_s30 }
  0x24   : > { %p2197_p9 = scmp.lt.u32.totalorder %s2188_s30, %s2505_s16 }
  0x25   : > { %p2191_p4 = pnand %p2190_p3, %p2189_p2  ;;  %p2196_p10 = por %p2195_p8, %p2194_p5 }
  0x27   : > { %p2192_p7 = pneg %p2191_p4  ;;  %p2198_p0 = por %p2197_p9, %p2196_p10 }
  0x29   : > { %p2199_p1 = pnand %p2198_p0, %p2192_p7 }
  0x2b   : > { %2202 = shalt.err (!%p2199_p1)
}
  0x2c   : > { %s2203_s25 = scalar_lea.vmem %s2515_s14, 128  ;;  %s2352_s17 = smov [#allocation2]  }
  0x2d   : > { %p2204_p2 = scmp.ne.s32.totalorder %s2515_s14, %s2203_s25  ;;  %s2208_s18 = sshll.u32 %s2352_s17, 4  ;;  %s2209_s18 = int_to_ptr.vmem [resolvable:$false] %s2208_s18 }
  0x2e   : > { %s2210_s21 = scalar_lea.vmem %s2209_s18, 256  ;;  %p2211_p11 = scmp.lt.s32.totalorder %s2515_s14, %s2209_s18 }
  0x2f   : > { %p2206_p4 = pnand %p2204_p2, %p2190_p3  ;;  %p2212_p5 = scmp.lt.s32.totalorder %s2210_s21, %s2203_s25 }
  0x31   : > { %p2207_p12 = pneg %p2206_p4  ;;  %p2213_p8 = por %p2212_p5, %p2211_p11 }
  0x33   : > { %p2214_p9 = pnand %p2213_p8, %p2207_p12 }
  0x35   : > { %2217 = shalt.err (!%p2214_p9)
}
  0x36   : > { %2086 = dma.hbm_to_vmem [thread:$0]  (!%p2511_p13), %s2505_s16, 128, %s2515_s14, %s403_s15  }
  0x37   : > { %p2926_p0 = scmp.lt.s32.totalorder %s2350_s28, 3  ;;  %p2927_p1 = scmp.ge.s32.totalorder %s2350_s28, 1 }
  0x38   : > { %s2929_s25 = sshll.u32 %s2350_s28, 7  ;;  %s2930_s18 = sshll.u32 %s2496_s22, 3 }
  0x39   : > { %p2549_p7 = pnand %p2927_p1, %p2926_p0  ;;  %s2558_s17 = scalar_lea.hbm %s2892_s3, %s2929_s25 }
  0x3a   : > { %s440_s21 = scalar_lea.vmem [#allocation5], %s2930_s18  ;;  %s437_s14 = scalar_lea.sflag [#allocation6], %s2496_s22 }
  0x3b   : > { %s2928_s23 = scalar_select %p2549_p7, 1, 0 }
  0x3c   : > { %s447_s0 = sshll.u32 %s440_s21, 4  ;;  %s2218_s16 = scalar_lea.hbm %s2558_s17, 128  ;;  %s448_s0 = int_to_ptr.vmem [resolvable:$true] %s447_s0 }
  0x3d   : > { %p2219_p11 = scmp.ne.s32.totalorder %s2558_s17, %s2218_s16  ;;  %s2223_s25 = scalar_lea.hbm %s2892_s3, 256 }
  0x3e   : > { %p2224_p2 = scmp.lt.u32.totalorder %s2558_s17, %s2892_s3  ;;  %p2225_p4 = scmp.lt.u32.totalorder %s2223_s25, %s2218_s16 }
  0x3f   : > { %p2221_p12 = pnand %p2219_p11, %p2190_p3  ;;  %p2227_p8 = scmp.lt.u32.totalorder %s2218_s16, %s2558_s17 }
  0x40   : > { %p2226_p5 = por %p2225_p4, %p2224_p2 }
  0x41   : > { %p2222_p10 = pneg %p2221_p12 }
  0x42   : > { %p2228_p9 = por %p2227_p8, %p2226_p5 }
  0x44   : > { %p2229_p0 = pnand %p2228_p9, %p2222_p10 }
  0x46   : > { %2232 = shalt.err (!%p2229_p0)
}
  0x47   : > { %s2233_s22 = scalar_lea.vmem %s448_s0, 128  ;;  %s2353_s18 = smov [#allocation5]  }
  0x48   : > { %p2234_p1 = scmp.ne.s32.totalorder %s448_s0, %s2233_s22  ;;  %s2238_s28 = sshll.u32 %s2353_s18, 4  ;;  %s2239_s28 = int_to_ptr.vmem [resolvable:$false] %s2238_s28 }
  0x49   : > { %s2240_s21 = scalar_lea.vmem %s2239_s28, 256  ;;  %p2241_p6 = scmp.lt.s32.totalorder %s448_s0, %s2239_s28 }
  0x4a   : > { %p2236_p11 = pnand %p2234_p1, %p2190_p3  ;;  %p2242_p7 = scmp.lt.s32.totalorder %s2240_s21, %s2233_s22 }
  0x4c   : > { %p2237_p12 = pneg %p2236_p11  ;;  %p2243_p2 = por %p2242_p7, %p2241_p6 }
  0x4e   : > { %p2244_p4 = pnand %p2243_p2, %p2237_p12 }
  0x50   : > { %2247 = shalt.err (!%p2244_p4)
}
  0x51   : > { %2089 = dma.hbm_to_vmem [thread:$0]  (!%p2511_p13), %s2558_s17, 128, %s448_s0, %s437_s14  }
  0x52   : > { %p2931_p10 = scmp.ne.s32.totalorder %s2928_s23, 0 }
  0x53   : > { %s2585_s16 = sand.u32 (!%p2931_p10), 1, %s2342_s26   ;;  %p2932_p6 = scmp.ne.s32.totalorder (!%p2931_p10), %s2920_s19, 0 }
  0x54   : > { %456 = sbr.rel (%p2931_p10) target bundleno = 3030 (0xbd6), region = 68  ;;  %s2588_s15 = sshll.u32 (!%p2931_p10), %s2585_s16, 3 }
  0x55   : > { %s459_s25 = scalar_lea.sflag (!%p2931_p10), [#allocation3], %s2585_s16 }
  0x5b   : > { %2321 = dma.done.wait (%p2932_p6), %s459_s25, 128  }
  0x5c   : > { %2323 = vsyncadd (%p2932_p6), %s459_s25, 4294967168  ;;  %s468_s0 = scalar_lea.sflag [#allocation6], %s2585_s16 }
  0x5d   : > { %2325 = dma.done.wait (%p2932_p6), %s468_s0, 128  }
  0x5e   : > { %2327 = vsyncadd (%p2932_p6), %s468_s0, 4294967168  ;;  %p534_p13 = scmp.lt.s32.totalorder %s2458_s29, 1  ;;  %v2354_v0 = vmov 0.0|0.0   ;;  %vm2355_vm0 = vmmov 0   ;;  %v2356_v1 = vmov 0.0   ;;  %vm562_vm1 = vcmask 261120  }
  0x5f   : > { %2015 = vmatprep.subr.bf16.mxu0 %v2354_v0  ;;  %1923 = vmatprep.mubr.msk.f32.mxu0 %vm2355_vm0, %v2356_v1  ;;  %v636_v2 = vld [vmem:[%s2895_s6] sm:$0xff]  ;;  %v637_v3 = vld [vmem:[%s2895_s6 + $0x8] sm:$0xff]  ;;  %v638_v4 = vld [vmem:[%s2895_s6 + $0x10] sm:$0xff]  ;;  %s2933_s25 = scalar_lea.vmem [#allocation2], %s2588_s15  ;;  %vm820_vm2 = vcmask 64512   ;;  %s2357_s22 = smov 120  }
  0x60   : > { %s2607_s23 = scalar_select %p534_p13, %s2458_s29, 1  ;;  %v2021_v5 = vpack.c.bf16 %v637_v3, %v636_v2  ;;  %v639_v6 = vld [vmem:[%s2895_s6 + $0x18] sm:$0xff]  ;;  %v551_v9 = vld [vmem:[%s2893_s4] sm:$0xff]  ;;  %v552_v10 = vld [vmem:[%s2893_s4 + $0x8] sm:$0xff]  ;;  %vm902_vm4 = vcmask 97280   ;;  %vm918_vm5 = vcmask 1043456  }
  0x61   : > { %v2025_v8 = vpack.c.bf16 %v639_v6, %v638_v4  ;;  %v2016_v11 = vpack.c.bf16 %v552_v10, %v551_v9  ;;  %v553_v12 = vld [vmem:[%s2893_s4 + $0x10] sm:$0xff]  ;;  %v554_v13 = vld [vmem:[%s2893_s4 + $0x18] sm:$0xff]  ;;  %v544_v16 = vld [vmem:[%s2933_s25] sm:$0xff]  ;;  %vm2358_vm6 = vmmov 1   ;;  %s2359_s27 = smov 112   ;;  %s2361_s25 = smov 8  }
  0x62   : > { %s1866_s17 = sshll.u32 %s2607_s23, 4  ;;  %2022 = vmatprep.subr.bf16.mxu1 %v2021_v5  ;;  %v2019_v14 = vpack.c.bf16 %v554_v13, %v553_v12  ;;  %v1828_v17 = vld [vmem:[%s2896_s7] ss:$0 sm:$0xff]  ;;  %vm2653_vm3 = vmpackc.low %vm820_vm2, %vm820_vm2  ;;  %v729_v30 = vld [vmem:[%s2897_s8 + $0x8] sm:$0xff]  ;;  %s2362_s0 = smov 16   ;;  %vm1537_vm8 = vcmask 130048  }
  0x63   : > { %s538_s30 = scalar_lea.vmem %s2890_s1, %s1866_s17  ;;  %2024 = vmatpush3.bf16.msra.mxu1 %v2021_v5  ;;  %2017 = vmatpush3.bf16.msra.mxu0 %v2016_v11  ;;  %v1826_v25 = vld [vmem:[%s2894_s5] ss:$0 sm:$0xff]  ;;  %s543_s21 = scalar_lea.vmem %s2891_s2, %s1866_s17  ;;  %v730_v31 = vld [vmem:[%s2897_s8 + $0x10] sm:$0xff]  ;;  %v731_v33 = vld [vmem:[%s2897_s8 + $0x18] sm:$0xff]  ;;  %vm1539_vm9 = vcmask 195584  }
  0x64   : > { %v545_v7 = vld [vmem:[%s538_s30] sm:$0xff]  ;;  %2026 = vmatprep.subr.bf16.mxu1 %v2025_v8  ;;  %2018 = vmatprep.subr.bf16.mxu0 %v2354_v0  ;;  %v546_v15 = vld [vmem:[%s538_s30 + $0x8] sm:$0xf]  ;;  %v2033_v35 = vpack.c.bf16 %v731_v33, %v730_v31  ;;  %s2936_s17 = scalar_lea.vmem [#allocation5], %s2588_s15  ;;  %vm2707_vm7 = vmpackc.low %vm918_vm5, %vm2358_vm6  ;;  %s1632_s23 = scalar_lea.sflag [#allocation9], %s2585_s16 }
  0x65   : > { %1934 = vmatprep.mubr.msk.f32.mxu1 %vm562_vm1, %v545_v7  ;;  %v728_v29 = vld [vmem:[%s2897_s8] sm:$0xff]  ;;  %v548_v36 = vld [vmem:[%s543_s21 + $0x8] sm:$0xf]  ;;  %v549_v37 = vld [vmem:[%s2936_s17] sm:$0xff]  ;;  %p2939_p7 = scmp.ne.s32.totalorder %s2921_s20, 0  ;;  %s2364_s18 = smov [#allocation8]  }
  0x66   : > { %v2029_v32 = vpack.c.bf16 %v729_v30, %v728_v29  ;;  %v547_v34 = vld [vmem:[%s543_s21] sm:$0xff]  ;;  %v2699_v38 = vmul.f32 -1e+09, %v549_v37  ;;  %s1821_s21 = sshll.u32 %s2585_s16, 5  ;;  %s2252_s28 = sshll.u32 %s2364_s18, 4  ;;  %s2253_s28 = int_to_ptr.vmem [resolvable:$false] %s2252_s28 }
  0x67   : > { %2028 = vmatpush3.bf16.msra.mxu1 %v2025_v8  ;;  %2020 = vmatpush3.bf16.msra.mxu0 %v2019_v14  ;;  %v1831_v51 = vld [vmem:[%s2898_s9] ss:$0 sm:$0xff]  ;;  %s2715_s24 = scalar_lea.vmem [#allocation8], %s1821_s21 }
  0x68   : > { %2037 = vmatprep.subr.bf16.mxu1 %v2354_v0  ;;  %2030 = vmatprep.subr.bf16.mxu0 %v2029_v32  ;;  %v1541_v55 = vld [vmem:[%s2899_s10] sm:$0xff] }
  0x6a   : > { %1935 = vmatmul.mubr.msk.f32.vlgmr.msra.gmra.mrb[0].mxu1 %vm562_vm1, %v546_v15  ;;  %1924 = vmatmul.mubr.msk.f32.vlgmr.msra.gmra.mrb[0].mxu0 %vm562_vm1, %v544_v16 }
  0x6b   : > { %1952 = vmatprep.mubr.msk.f32.mxu1 %vm2355_vm0, %v2356_v1  ;;  %1945 = vmatprep.mubr.msk.f32.mxu0 %vm562_vm1, %v547_v34 }
  0x6c   : > { %2032 = vmatpush3.bf16.msra.mxu0 %v2029_v32 }
  0x6d   : > { %2034 = vmatprep.subr.bf16.mxu0 %v2033_v35 }
  0x70   : > { %2036 = vmatpush3.bf16.msra.mxu0 %v2033_v35 }
  0x71   : > { %2049 = vmatprep.subr.bf16.mxu0 %v2354_v0 }
  0x73   : > { %1946 = vmatmul.mubr.msk.f32.vlgmr.msra.gmra.mrb[2].mxu0 %vm562_vm1, %v548_v36 }
  0x74   : > { %1973 = vmatprep.mubr.msk.f32.mxu0 %vm2355_vm0, %v2356_v1 }
 0x13d   : > { %v1936_v18 = vpop.f32.mrb[0].mxu1  ;;  %v632_v21 = vpop.f32.mrb[0].mxu0 }
 0x13e   : > { %v725_v19 = vadd.f32 %v1936_v18, %v1828_v17  ;;  %v719_v20 = vpop.f32.mrb[1].mxu1  ;;  %v1925_v23 = vpop.f32.mrb[1].mxu0  ;;  %v2666_v28 = vadd.f32 %v1826_v25, %v632_v21 }
 0x13f   : > { %v720_v22 = vadd.f32 %v1828_v17, %v719_v20 }
 0x141   : > { %v2038_v26 = vpack.c.bf16 %v725_v19, %v720_v22  ;;  %v2660_v27 = vpack.i.bf16 %v725_v19, %v720_v22 }
 0x143   : > { %2143 = vrot.lane.b32.xlu1 %v2660_v27, %s2357_s22  ;;  %2040 = vmatpush3.bf16.xpose.msk.msra.mxu1 %vm2653_vm3, %v2038_v26 }
 0x144   : > { %2041 = vmatprep.subr.bf16.mxu1 %v2354_v0 }
 0x146   : > { %v1947_v44 = vpop.f32.mrb[2].mxu0 }
 0x147   : > { %992 = vrot.lane.b32.xlu1 %v2666_v28, %s2357_s22  ;;  %v811_v45 = vpop.f32.mrb[3].mxu0  ;;  %v817_v52 = vadd.f32 %v1947_v44, %v1831_v51 }
 0x148   : > { %v812_v53 = vadd.f32 %v1831_v51, %v811_v45 }
 0x14a   : > { %1953 = vmatmul.mubr.msk.f32.vlgmr.msra.gmra.mrb[2].mxu1 %vm820_vm2, %v2666_v28  ;;  %v2042_v54 = vpack.c.bf16 %v817_v52, %v812_v53  ;;  %v2732_v9 = vpack.i.bf16 %v817_v52, %v812_v53 }
 0x14b   : > { %1959 = vmatprep.mubr.msk.f32.mxu1 %vm2355_vm0, %v2356_v1 }
 0x14c   : > { %2044 = vmatpush3.bf16.msk.msra.mxu1 %vm2707_vm7, %v2042_v54 }
 0x14d   : > { %2045 = vmatprep.subr.bf16.mxu1 %v2354_v0 }
 0x1b5   : > { %v2144_v57 = vpop.permute.xlu1 %2143 }
 0x1b6   : > { %v2146_v58 = vunpack.i.h.bf16 %v2144_v57  ;;  %v2145_v59 = vunpack.i.l.bf16 %v2144_v57 }
 0x1b8   : > { %v2046_v62 = vpack.c.bf16 %v2146_v58, %v2145_v59 }
 0x1b9   : > { %v993_v63 = vpop.permute.xlu1 %992 }
 0x21d   : > { %v896_v39 = vpop.f32.mrb[2].mxu1 }
 0x21e   : > { %v900_v40 = vmul.f32 0.35355338, %v896_v39  ;;  %v1954_v41 = vpop.f32.mrb[3].mxu1 }
 0x220   : > { %v901_v42 = vadd.f32 %v900_v40, %v2699_v38 }
 0x222   : > { %v903_v43 = vsel %vm902_vm4, %v901_v42, -inf }
 0x223   : > { %904 = vmax.xlane.f32.xlu0 %v903_v43 }
 0x2b0   : > { %v905_v46 = vpop.xlane.xlu0 %904 }
 0x2b1   : > { %v906_v47 = vsub.f32 %v901_v42, %v905_v46 }
 0x2b3   : > { %v907_v48 = vmul.f32 1.442695, %v906_v47 }
 0x2b5   : > { %2172 = vpow2.f32 %v907_v48 }
 0x2bf   : > { %v2173_v49 = vpop.eup %2172 }
 0x2c0   : > { %v909_v50 = vsel %vm902_vm4, %v2173_v49, 0.0 }
 0x2c1   : > { %910 = vadd.xlane.f32.xlu0 %v909_v50 }
 0x34e   : > { %v911_v56 = vpop.xlane.xlu0 %910 }
 0x34f   : > { %2174 = vrcp.f32 %v911_v56 }
 0x359   : > { %v2175_v60 = vpop.eup %2174 }
 0x35a   : > { %v913_v61 = vmul.f32 %v2175_v60, %v2173_v49 }
 0x35c   : > { %914 = vst.msk [vmem:[%s2715_s24] sm:$0xff] %vm902_vm4, %v913_v61  ;;  %1960 = vmatmul.mubr.msk.f32.vlgmr.msra.gmra.mrb[4].mxu1 %vm902_vm4, %v913_v61 }
 0x35d   : > { %2048 = vmatpush3.bf16.xpose.msk.msra.mxu1 %vm2653_vm3, %v2046_v62  ;;  %1966 = vmatprep.mubr.msk.f32.mxu1 %vm2355_vm0, %v2356_v1 }
 0x35e   : > { %2057 = vmatprep.subr.bf16.mxu1 %v2354_v0 }
 0x364   : > { %1967 = vmatmul.mubr.msk.f32.vlgmr.msra.gmra.mrb[6].mxu1 %vm820_vm2, %v993_v63 }
 0x365   : > { %1987 = vmatprep.mubr.msk.f32.mxu1 %vm2355_vm0, %v2356_v1 }
 0x42f   : > { %v2728_v2 = vpop.f32.mrb[4].mxu1 }
 0x430   : > { %v1961_v3 = vpop.f32.mrb[5].mxu1 }
 0x437   : > { %v1070_v4 = vpop.f32.mrb[6].mxu1 }
 0x438   : > { %v1074_v5 = vmul.f32 0.35355338, %v1070_v4  ;;  %v1968_v6 = vpop.f32.mrb[7].mxu1 }
 0x43a   : > { %v1075_v7 = vadd.f32 %v1074_v5, %v2699_v38 }
 0x43c   : > { %v1076_v8 = vsel %vm902_vm4, %v1075_v7, -inf }
 0x43d   : > { %1077 = vmax.xlane.f32.xlu0 %v1076_v8 }
 0x453   : > { %2148 = vrot.lane.b32.xlu0 %v2732_v9, %s2357_s22  ;;  %s2360_s22 = smov 104  }
 0x457   : > { %2153 = vrot.lane.b32.xlu0 %v2660_v27, %s2359_s27 }
 0x45b   : > { %1170 = vrot.lane.b32.xlu0 %v2666_v28, %s2359_s27 }
 0x4ca   : > { %v1078_v10 = vpop.xlane.xlu0 %1077 }
 0x4cb   : > { %v1079_v11 = vsub.f32 %v1075_v7, %v1078_v10  ;;  %v1542_v10 = vld [vmem:[%s2899_s10 + $0x8] sm:$0xff] }
 0x4cd   : > { %v1080_v12 = vmul.f32 1.442695, %v1079_v11  ;;  %v1543_v11 = vld [vmem:[%s2899_s10 + $0x10] sm:$0xff] }
 0x4ce   : > { %v2149_v13 = vpop.permute.xlu0 %2148 }
 0x4cf   : > { %2176 = vpow2.f32 %v1080_v12  ;;  %v2151_v14 = vunpack.i.h.bf16 %v2149_v13  ;;  %v2150_v15 = vunpack.i.l.bf16 %v2149_v13  ;;  %v2070_v12 = vpack.c.bf16 %v1542_v10, %v1541_v55  ;;  %v1544_v13 = vld [vmem:[%s2899_s10 + $0x18] sm:$0xff] }
 0x4d1   : > { %v2050_v16 = vpack.c.bf16 %v2151_v14, %v2150_v15  ;;  %v2073_v14 = vpack.c.bf16 %v1544_v13, %v1543_v11 }
 0x4d2   : > { %v2154_v23 = vpop.permute.xlu0 %2153 }
 0x4d3   : > { %2052 = vmatpush3.bf16.msk.msra.mxu0 %vm2707_vm7, %v2050_v16  ;;  %v2156_v26 = vunpack.i.h.bf16 %v2154_v23  ;;  %v2155_v29 = vunpack.i.l.bf16 %v2154_v23 }
 0x4d4   : > { %2053 = vmatprep.subr.bf16.mxu0 %v2354_v0 }
 0x4d5   : > { %v2054_v32 = vpack.c.bf16 %v2156_v26, %v2155_v29 }
 0x4d9   : > { %v2177_v17 = vpop.eup %2176 }
 0x4da   : > { %v1082_v18 = vsel %vm902_vm4, %v2177_v17, 0.0 }
 0x4db   : > { %1083 = vadd.xlane.f32.xlu1 %v1082_v18 }
 0x4ec   : > { %2158 = vrot.lane.b32.xlu1 %v2732_v9, %s2359_s27  ;;  %s2363_s27 = smov 24  }
 0x4f0   : > { %2163 = vrot.lane.b32.xlu1 %v2660_v27, %s2360_s22  ;;  %v1171_v27 = vpop.permute.xlu0 %1170 }
 0x568   : > { %v1084_v19 = vpop.xlane.xlu1 %1083 }
 0x569   : > { %2178 = vrcp.f32 %v1084_v19 }
 0x56c   : > { %v2159_v20 = vpop.permute.xlu1 %2158 }
 0x56d   : > { %v2161_v21 = vunpack.i.h.bf16 %v2159_v20  ;;  %v2160_v22 = vunpack.i.l.bf16 %v2159_v20 }
 0x56f   : > { %v2058_v25 = vpack.c.bf16 %v2161_v21, %v2160_v22 }
 0x570   : > { %v2164_v46 = vpop.permute.xlu1 %2163 }
 0x571   : > { %2060 = vmatpush3.bf16.msk.msra.mxu1 %vm2707_vm7, %v2058_v25  ;;  %v2166_v48 = vunpack.i.h.bf16 %v2164_v46  ;;  %v2165_v49 = vunpack.i.l.bf16 %v2164_v46 }
 0x572   : > { %2061 = vmatprep.subr.bf16.mxu1 %v2354_v0 }
 0x573   : > { %v2179_v30 = vpop.eup %2178  ;;  %v2062_v52 = vpack.c.bf16 %v2166_v48, %v2165_v49 }
 0x574   : > { %v1086_v31 = vmul.f32 %v2179_v30, %v2177_v17 }
 0x576   : > { %1842 = vst.msk [vmem:[%s2715_s24 + $0x8] sm:$0xff] %vm902_vm4, %v1086_v31  ;;  %1974 = vmatmul.mubr.msk.f32.vlgmr.msra.gmra.mrb[4].mxu0 %vm902_vm4, %v1086_v31 }
 0x577   : > { %2056 = vmatpush3.bf16.xpose.msk.msra.mxu0 %vm2653_vm3, %v2054_v32  ;;  %1980 = vmatprep.mubr.msk.f32.mxu0 %vm2355_vm0, %v2356_v1 }
 0x578   : > { %2065 = vmatprep.subr.bf16.mxu0 %v2354_v0 }
 0x57e   : > { %1981 = vmatmul.mubr.msk.f32.vlgmr.msra.gmra.mrb[6].mxu0 %vm820_vm2, %v1171_v27 }
 0x57f   : > { %2001 = vmatprep.mubr.msk.f32.mxu0 %vm2355_vm0, %v2356_v1 }
 0x649   : > { %v1166_v33 = vpop.f32.mrb[4].mxu0 }
 0x64a   : > { %v1975_v34 = vpop.f32.mrb[5].mxu0 }
 0x651   : > { %v1248_v35 = vpop.f32.mrb[6].mxu0 }
 0x652   : > { %v1252_v36 = vmul.f32 0.35355338, %v1248_v35  ;;  %v1982_v37 = vpop.f32.mrb[7].mxu0 }
 0x654   : > { %v1253_v39 = vadd.f32 %v1252_v36, %v2699_v38 }
 0x656   : > { %v1254_v40 = vsel %vm902_vm4, %v1253_v39, -inf }
 0x657   : > { %1255 = vmax.xlane.f32.xlu0 %v1254_v40 }
 0x6e4   : > { %v1256_v41 = vpop.xlane.xlu0 %1255 }
 0x6e5   : > { %v1257_v42 = vsub.f32 %v1253_v39, %v1256_v41 }
 0x6e7   : > { %v1258_v43 = vmul.f32 1.442695, %v1257_v42 }
 0x6e9   : > { %2180 = vpow2.f32 %v1258_v43 }
 0x6f3   : > { %v2181_v44 = vpop.eup %2180 }
 0x6f4   : > { %v1260_v45 = vsel %vm902_vm4, %v2181_v44, 0.0 }
 0x6f5   : > { %1261 = vadd.xlane.f32.xlu1 %v1260_v45 }
 0x706   : > { %1347 = vrot.lane.b32.xlu1 %v2666_v28, %s2360_s22 }
 0x782   : > { %v1262_v47 = vpop.xlane.xlu1 %1261 }
 0x783   : > { %2182 = vrcp.f32 %v1262_v47 }
 0x786   : > { %v1348_v53 = vpop.permute.xlu1 %1347 }
 0x78d   : > { %v2183_v50 = vpop.eup %2182 }
 0x78e   : > { %v1264_v51 = vmul.f32 %v2183_v50, %v2181_v44 }
 0x790   : > { %1848 = vst.msk [vmem:[%s2715_s24 + $0x10] sm:$0xff] %vm902_vm4, %v1264_v51  ;;  %1988 = vmatmul.mubr.msk.f32.vlgmr.msra.gmra.mrb[8].mxu1 %vm902_vm4, %v1264_v51 }
 0x791   : > { %2064 = vmatpush3.bf16.xpose.msk.msra.mxu1 %vm2653_vm3, %v2062_v52  ;;  %1994 = vmatprep.mubr.msk.f32.mxu1 %vm2355_vm0, %v2356_v1 }
 0x798   : > { %1995 = vmatmul.mubr.msk.f32.vlgmr.msra.gmra.mrb[10].mxu1 %vm820_vm2, %v1348_v53 }
 0x863   : > { %v1343_v28 = vpop.f32.mrb[8].mxu1 }
 0x864   : > { %v1989_v54 = vpop.f32.mrb[9].mxu1 }
 0x86b   : > { %v1425_v56 = vpop.f32.mrb[10].mxu1 }
 0x86c   : > { %v1429_v57 = vmul.f32 0.35355338, %v1425_v56  ;;  %v1996_v58 = vpop.f32.mrb[11].mxu1 }
 0x86e   : > { %v1430_v59 = vadd.f32 %v1429_v57, %v2699_v38 }
 0x870   : > { %v1431_v60 = vsel %vm902_vm4, %v1430_v59, -inf }
 0x871   : > { %1432 = vmax.xlane.f32.xlu0 %v1431_v60 }
 0x887   : > { %2168 = vrot.lane.b32.xlu0 %v2732_v9, %s2360_s22  ;;  %s1868_s22 = sshll.u32 %s2458_s29, 9 }
 0x888   : > { %s2807_s19 = scalar_lea.hbm %s2902_s13, %s1868_s22 }
 0x88b   : > { %1525 = vrot.lane.b32.xlu0 %v1166_v33, %s2361_s25 }
 0x88f   : > { %1529 = vrot.lane.b32.xlu0 %v1343_v28, %s2362_s0  ;;  %s1658_s0 = sshll.u32 %s2715_s24, 4  ;;  %s2809_s0 = int_to_ptr.vmem [resolvable:$true] %s1658_s0 }
 0x890   : > { %s2248_s17 = scalar_lea.vmem %s2809_s0, 512  ;;  %p2255_p9 = scmp.lt.s32.totalorder %s2809_s0, %s2253_s28 }
 0x891   : > { %p2249_p3 = scmp.ne.s32.totalorder %s2809_s0, %s2248_s17 }
 0x893   : > { %p2250_p5 = pnand %p2249_p3, %p2939_p7 }
 0x895   : > { %p2251_p8 = pneg %p2250_p5 }
 0x8fe   : > { %v1433_v24 = vpop.xlane.xlu0 %1432 }
 0x8ff   : > { %v1434_v61 = vsub.f32 %v1430_v59, %v1433_v24 }
 0x901   : > { %v1435_v62 = vmul.f32 1.442695, %v1434_v61 }
 0x902   : > { %v2169_v63 = vpop.permute.xlu0 %2168 }
 0x903   : > { %2184 = vpow2.f32 %v1435_v62  ;;  %v2171_v3 = vunpack.i.h.bf16 %v2169_v63  ;;  %v2170_v4 = vunpack.i.l.bf16 %v2169_v63 }
 0x905   : > { %v2066_v38 = vpack.c.bf16 %v2171_v3, %v2170_v4 }
 0x906   : > { %v1526_v16 = vpop.permute.xlu0 %1525 }
 0x907   : > { %2068 = vmatpush3.bf16.msk.msra.mxu0 %vm2707_vm7, %v2066_v38  ;;  %v1536_v18 = vsel %vm820_vm2, %v2728_v2, %v1526_v16 }
 0x908   : > { %2069 = vmatprep.subr.bf16.mxu0 %v2354_v0 }
 0x90a   : > { %v1530_v17 = vpop.permute.xlu0 %1529 }
 0x90b   : > { %v1538_v19 = vsel %vm1537_vm8, %v1536_v18, %v1530_v17 }
 0x90d   : > { %v2185_v5 = vpop.eup %2184 }
 0x90e   : > { %v1437_v6 = vsel %vm902_vm4, %v2185_v5, 0.0 }
 0x90f   : > { %1438 = vadd.xlane.f32.xlu1 %v1437_v6 }
 0x99c   : > { %v1439_v7 = vpop.xlane.xlu1 %1438 }
 0x99d   : > { %2186 = vrcp.f32 %v1439_v7 }
 0x9a7   : > { %v2187_v8 = vpop.eup %2186 }
 0x9a8   : > { %v1441_v9 = vmul.f32 %v2187_v8, %v2185_v5 }
 0x9aa   : > { %1854 = vst.msk [vmem:[%s2715_s24 + $0x18] sm:$0xff] %vm902_vm4, %v1441_v9  ;;  %2002 = vmatmul.mubr.msk.f32.vlgmr.msra.gmra.mrb[8].mxu0 %vm902_vm4, %v1441_v9  ;;  %s2254_s24 = scalar_lea.vmem %s2253_s28, 1024 }
 0x9ab   : > { %2012 = vmatprep.mubr.msk.f32.mxu0 %vm2355_vm0, %v2356_v1  ;;  %2071 = vmatpush3.bf16.msra.mxu0 %v2070_v12  ;;  %p2256_p0 = scmp.lt.s32.totalorder %s2254_s24, %s2248_s17 }
 0x9ac   : > { %2072 = vmatprep.subr.bf16.mxu0 %v2354_v0 }
 0x9ad   : > { %p2257_p1 = por %p2256_p0, %p2255_p9 }
 0x9af   : > { %2074 = vmatpush3.bf16.msra.mxu0 %v2073_v14  ;;  %p2258_p11 = pnand %p2257_p1, %p2251_p8 }
 0xa7d   : > { %v1520_v1 = vpop.f32.mrb[8].mxu0 }
 0xa7e   : > { %1533 = vrot.lane.b32.xlu0 %v1520_v1, %s2363_s27  ;;  %v2003_v15 = vpop.f32.mrb[9].mxu0 }
 0xaf0   : > { %v1534_v20 = vpop.permute.xlu0 %1533 }
 0xaf1   : > { %v1540_v21 = vsel %vm1539_vm9, %v1538_v19, %v1534_v20 }
 0xaf2   : > { %2013 = vmatmul.mubr.msk.f32.vlgmr.msra.gmra.mrb[10].mxu0 %vm562_vm1, %v1540_v21 }
 0xaf3   : > { %2261 = shalt.err (!%p2258_p11)
}
 0xaf4   : > { %s2262_s21 = scalar_lea.hbm %s2807_s19, 512  ;;  %s2266_s14 = scalar_lea.hbm %s2902_s13, 1024 }
 0xaf5   : > { %p2263_p12 = scmp.ne.s32.totalorder %s2807_s19, %s2262_s21  ;;  %p2267_p10 = scmp.lt.u32.totalorder %s2807_s19, %s2902_s13 }
 0xaf6   : > { %p2268_p6 = scmp.lt.u32.totalorder %s2266_s14, %s2262_s21  ;;  %p2270_p3 = scmp.lt.u32.totalorder %s2262_s21, %s2807_s19 }
 0xaf7   : > { %p2264_p2 = pnand %p2263_p12, %p2939_p7 }
 0xaf8   : > { %p2269_p13 = por %p2268_p6, %p2267_p10 }
 0xaf9   : > { %p2265_p4 = pneg %p2264_p2 }
 0xafa   : > { %p2271_p5 = por %p2270_p3, %p2269_p13 }
 0xafc   : > { %p2272_p8 = pnand %p2271_p5, %p2265_p4 }
 0xafe   : > { %2275 = shalt.err (!%p2272_p8)
}
 0xaff   : > { %s2365_s17 = smov 128   ;;  %v1857_v0 = vld [vmem:[%s2900_s11] ss:$0 sm:$0xff]  ;;  %s1861_s21 = sshll.u32 %s2458_s29, 7 }
 0xb00   : > { %2080 = dma.vmem_to_hbm [thread:$0]  (%p2939_p7), %s2809_s0, 512, %s2807_s19, %s1632_s23, %s2365_s17, %s2365_s17, %s2361_s25  }
 0xb01   : > { %s526_s27 = scalar_lea.vmem [#allocation7], %s2588_s15  ;;  %s2844_s18 = scalar_lea.hbm %s2901_s12, %s1861_s21 }
 0xb02   : > { %s1645_s22 = sshll.u32 %s526_s27, 4  ;;  %s1627_s25 = scalar_lea.sflag [#allocation4], %s2585_s16  ;;  %s2846_s22 = int_to_ptr.vmem [resolvable:$true] %s1645_s22 }
 0xb03   : > { %s2276_s0 = scalar_lea.vmem %s2846_s22, 128  ;;  %s2366_s29 = smov [#allocation7]  }
 0xb04   : > { %p2277_p9 = scmp.ne.s32.totalorder %s2846_s22, %s2276_s0  ;;  %s2280_s15 = sshll.u32 %s2366_s29, 4  ;;  %s2281_s15 = int_to_ptr.vmem [resolvable:$false] %s2280_s15 }
 0xb05   : > { %s2282_s19 = scalar_lea.vmem %s2281_s15, 256  ;;  %p2283_p11 = scmp.lt.s32.totalorder %s2846_s22, %s2281_s15 }
 0xb06   : > { %p2278_p0 = pnand %p2277_p9, %p2939_p7  ;;  %p2284_p12 = scmp.lt.s32.totalorder %s2282_s19, %s2276_s0 }
 0xb08   : > { %p2279_p1 = pneg %p2278_p0  ;;  %p2285_p2 = por %p2284_p12, %p2283_p11 }
 0xb0a   : > { %p2286_p4 = pnand %p2285_p2, %p2279_p1 }
 0xbc5   : > { %v1621_v2 = vpop.f32.mrb[10].mxu0 }
 0xbc6   : > { %v1622_v22 = vadd.f32 %v1857_v0, %v1621_v2  ;;  %v2014_v23 = vpop.f32.mrb[11].mxu0 }
 0xbc8   : > { %1625 = vst.msk [vmem:[%s526_s27] sm:$0xff] %vm562_vm1, %v1622_v22 }
 0xbc9   : > { %2289 = shalt.err (!%p2286_p4)
}
 0xbca   : > { %s2290_s16 = scalar_lea.hbm %s2844_s18, 128  ;;  %s2294_s28 = scalar_lea.hbm %s2901_s12, 256 }
 0xbcb   : > { %p2291_p10 = scmp.ne.s32.totalorder %s2844_s18, %s2290_s16  ;;  %p2295_p3 = scmp.lt.u32.totalorder %s2844_s18, %s2901_s12 }
 0xbcc   : > { %p2296_p5 = scmp.lt.u32.totalorder %s2294_s28, %s2290_s16  ;;  %p2298_p9 = scmp.lt.u32.totalorder %s2290_s16, %s2844_s18 }
 0xbcd   : > { %p2292_p6 = pnand %p2291_p10, %p2939_p7 }
 0xbce   : > { %p2297_p8 = por %p2296_p5, %p2295_p3 }
 0xbcf   : > { %p2293_p13 = pneg %p2292_p6 }
 0xbd0   : > { %p2299_p0 = por %p2298_p9, %p2297_p8 }
 0xbd2   : > { %p2300_p1 = pnand %p2299_p0, %p2293_p13 }
 0xbd4   : > { %2303 = shalt.err (!%p2300_p1)
}
 0xbd5   : > { %2079 = dma.vmem_to_hbm [thread:$0]  (%p2939_p7), %s2846_s22, 128, %s2844_s18, %s1627_s25  }
 0xbd6 PF: > { %s2940_s27 = sld [smem:[#allocation14_spill]]  ;;  %s2941_s14 = sld [smem:[#allocation19_spill]] }
 0xbd7   : > { %s2942_s30 = sld [smem:[#allocation16_spill]] }
 0xbdc   : > { %s1673_s0 = sand.u32 1, %s2940_s27   ;;  %p2943_p11 = scmp.ne.s32.totalorder %s2941_s14, 0 }
 0xbdd   : > { %p2944_p12 = scmp.ge.s32.totalorder %s2942_s30, 2  ;;  %s1674_s29 = scalar_lea.sflag [#allocation4], %s1673_s0 }
 0xbdf   : > { %p2091_p2 = pnand %p2944_p12, %p2943_p11 }
 0xbe1   : > { %2329 = dma.done.wait (!%p2091_p2), %s1674_s29, 128  }
 0xbe2   : > { %2331 = vsyncadd (!%p2091_p2), %s1674_s29, 4294967168  ;;  %s1683_s15 = scalar_lea.sflag [#allocation9], %s1673_s0 }
 0xbe3   : > { %2333 = dma.done.wait (!%p2091_p2), %s1683_s15, 512  }
 0xbe4   : > { %2335 = vsyncadd (!%p2091_p2), %s1683_s15, 4294966784  ;;  %s2945_s28 = sld [smem:[#allocation17_spill]]  ;;  %s2946_s20 = sld [smem:[#allocation15_spill]] }
 0xbe5   : > { %s2947_s27 = sld [smem:[#allocation18_spill]]  ;;  %s2948_s25 = smov %s2342_s26 }
 0xbea   : > { %p33_p7 = scmp.ge.s32.totalorder %s2945_s28, 4   ;;  %s2949_s26 = smov %s2946_s20 }
 0xbec   :  { %35 = sbr.rel (!%p33_p7) target bundleno = 11 (0xb), region = 152 }
 0xbf3   :  { %1688 = vsyncpa [#allocation3], 1 }
 0xbf4   :  { %1690 = vsyncpa [#allocation3 + $0x1], 1 }
 0xbf5   :  { %1691 = vsyncpa [#allocation6], 1 }
 0xbf6   :  { %1693 = vsyncpa [#allocation6 + $0x1], 1 }
 0xbf7   :  { %1694 = vsyncpa [#allocation4], 1 }
 0xbf8   :  { %1696 = vsyncpa [#allocation4 + $0x1], 1 }
 0xbf9   :  { %1697 = vsyncpa [#allocation9], 1 }
 0xbfa   :  { %1699 = vsyncpa [#allocation9 + $0x1], 1 }

</bundles_post_ra>
